<compile_context>
chip_gen: v7x
topology: tpu7x:2x2x1
jax: 0.10.0
libtpu: 0.0.40
codegen_flags: <defaults>
</compile_context>

<pallas_src>
import jax
import jax.numpy as jnp
import numpy as np
from jax.experimental import pallas as pl
from jax.experimental.pallas import tpu as pltpu


_TILE_BUDGET = 16 * 1024 * 1024   # double-buffered in+out tile bytes per step
_MIN_STEPS = 8                    # enough steps for megacore + pipelining


def _round_up(v, m):
    return (v + m - 1) // m * m


def _tile_bytes(cb, hb, w, itemsize):
    """Double-buffered VMEM footprint of one step's input + output tiles."""
    in_b = cb * 4 * _round_up(hb, 8) * _round_up(w, 128) * itemsize
    out_b = cb * _round_up(hb, 8) * _round_up(4 * w, 128) * itemsize
    return 2 * (in_b + out_b)


def _pick_tiles(n, c_out, h, w, itemsize):
    """Choose (cb, hb): output channels fused per step and the H block size."""
    # H block: full H if a single channel fits the budget, otherwise the
    # largest multiple-of-8 divisor of H that fits (BlockSpec requires H blocks
    # to be multiples of 8 unless they cover the whole axis).
    hb = h
    if _tile_bytes(1, h, w, itemsize) > _TILE_BUDGET and h % 8 == 0:
        hb = 8
        for cand in range(8, h, 8):
            if h % cand == 0 and _tile_bytes(1, cand, w, itemsize) <= _TILE_BUDGET:
                hb = cand

    # Channel fusion: largest divisor of C_out that still fits the budget.
    cb = 1
    for cand in range(1, c_out + 1):
        if c_out % cand == 0 and _tile_bytes(cand, hb, w, itemsize) <= _TILE_BUDGET:
            cb = cand

    # Keep at least _MIN_STEPS grid steps when possible so both v7x
    # TensorCores get several pipelined steps each.
    def steps(cb_):
        return n * (c_out // cb_) * (h // hb)

    while cb > 1 and steps(cb) < _MIN_STEPS:
        cb -= 1
        while c_out % cb:
            cb -= 1
    return cb, hb


def _unsqueeze_kernel(eo_ref, x_ref, o_ref):
    # eo_ref: (2, W, 2W)  resident 0/1 matrices (E -> even cols, O -> odd cols)
    # x_ref : (1, cb, 4, hb, W)  the 4 input planes of cb output channels
    # o_ref : (1, cb, hb, 4W)    free view of (1, cb, 2*hb, 2W)
    cb = x_ref.shape[1]
    hb = x_ref.shape[3]
    W = x_ref.shape[4]
    ct = eo_ref.dtype            # matmul operand dtype (bf16 fast path or f32)
    f32 = jnp.float32
    E = eo_ref[0]
    O = eo_ref[1]

    a = x_ref[0, :, 0, :, :].astype(ct)   # -> row 2h,   col 2w
    b = x_ref[0, :, 1, :, :].astype(ct)   # -> row 2h,   col 2w+1
    c = x_ref[0, :, 2, :, :].astype(ct)   # -> row 2h+1, col 2w
    d = x_ref[0, :, 3, :, :].astype(ct)   # -> row 2h+1, col 2w+1

    if hb % 8 == 0:
        # Stack the fused channels along the MXU M dimension (layout-trivial
        # reshapes since hb is a multiple of the sublane tile).
        a2, b2, c2, d2 = [t.reshape(cb * hb, W) for t in (a, b, c, d)]
        left = (jnp.dot(a2, E, preferred_element_type=f32)
                + jnp.dot(b2, O, preferred_element_type=f32))
        right = (jnp.dot(c2, E, preferred_element_type=f32)
                 + jnp.dot(d2, O, preferred_element_type=f32))
        out = jnp.concatenate([left, right], axis=-1)          # (cb*hb, 4W)
        o_ref[0] = out.reshape(cb, hb, 4 * W).astype(o_ref.dtype)
    else:
        # hb not a sublane multiple: keep channel fusion but use plain 2-D dots
        # per channel (static unroll) to avoid non-trivial relayouts.
        for ci in range(cb):
            left = (jnp.dot(a[ci], E, preferred_element_type=f32)
                    + jnp.dot(b[ci], O, preferred_element_type=f32))
            right = (jnp.dot(c[ci], E, preferred_element_type=f32)
                     + jnp.dot(d[ci], O, preferred_element_type=f32))
            o_ref[0, ci] = jnp.concatenate(
                [left, right], axis=-1).astype(o_ref.dtype)


def unsqueeze(x):
    """Pallas implementation of UnSqueeze.forward for NCHW float input."""
    N, C, H, W = x.shape
    assert C % 4 == 0, "UnSqueeze requires C divisible by 4"
    assert x.dtype in (jnp.float32, jnp.bfloat16, jnp.float16), (
        "float32/bfloat16/float16 only: the 0/1-matrix interleave path "
        "is exact only for these dtypes")
    C_out = C // 4
    itemsize = jnp.dtype(x.dtype).itemsize
    cb, hb = _pick_tiles(N, C_out, H, W, itemsize)

    # bfloat16 runs natively on the MXU (exact: multipliers are 0/1 and the
    # accumulation is f32); everything else is upcast to f32 in the kernel.
    eo_dtype = jnp.bfloat16 if x.dtype == jnp.bfloat16 else jnp.float32

    # E interleaves into even output columns, O into odd ones.  Built host-side
    # in numpy so it is a constant, never re-traced per call.
    eo_np = np.zeros((2, W, 2 * W), dtype=np.float32)
    eo_np[0, np.arange(W), 2 * np.arange(W)] = 1.0
    eo_np[1, np.arange(W), 2 * np.arange(W) + 1] = 1.0
    eo = jnp.asarray(eo_np, dtype=eo_dtype)

    # Free views: split the channel axis; expose the output as (N, C_out, H, 4W)
    # which is row-major identical to (N, C_out, 2H, 2W).
    x_v = x.reshape(N, C_out, 4, H, W)

    # Honest VMEM accounting: double-buffered tiles + two buffers of E/O + slack.
    eo_bytes = (2 * _round_up(W, 8) * _round_up(2 * W, 128)
                * jnp.dtype(eo_dtype).itemsize)
    vmem_limit = int(min(max(_tile_bytes(cb, hb, W, itemsize) + 2 * eo_bytes
                             + (8 << 20), 32 << 20), 60 << 20))

    out = pl.pallas_call(
        _unsqueeze_kernel,
        out_shape=jax.ShapeDtypeStruct((N, C_out, H, 4 * W), x.dtype),
        grid_spec=pltpu.PrefetchScalarGridSpec(
            num_scalar_prefetch=0,
            grid=(N, C_out // cb, H // hb),
            in_specs=[
                pl.BlockSpec((2, W, 2 * W), lambda n, c, h: (0, 0, 0)),
                pl.BlockSpec((1, cb, 4, hb, W), lambda n, c, h: (n, c, 0, h, 0)),
            ],
            out_specs=pl.BlockSpec((1, cb, hb, 4 * W),
                                   lambda n, c, h: (n, c, h, 0)),
        ),
        compiler_params=pltpu.CompilerParams(
            dimension_semantics=("parallel", "parallel", "parallel"),
            vmem_limit_bytes=vmem_limit),
    )(eo, x_v)

    return out.reshape(N, C_out, 2 * H, 2 * W)


def unsqueeze_ref(x):
    """Pure-JAX reference mirroring the PyTorch view/permute/view exactly."""
    N, C, H, W = x.shape
    y = x.reshape(N, C // 4, 2, 2, H, W)
    y = jnp.transpose(y, (0, 1, 4, 2, 5, 3))
    return y.reshape(N, C // 4, 2 * H, 2 * W)


if __name__ == "__main__":
    key = jax.random.PRNGKey(0)
    # N=2, C=8 (divisible by 4), H=W=16  ->  output (2, 2, 32, 32)
    x = jax.random.normal(key, (2, 8, 16, 16), dtype=jnp.float32)

    out = jax.block_until_ready(unsqueeze(x))
    ref = unsqueeze_ref(x)

    assert out.shape == (2, 2, 32, 32), out.shape
    assert jnp.allclose(out, ref), "Pallas output does not match reference"
    print("KERNEL_OK")
</pallas_src>

<mosaic_0001>
module attributes {stable_mosaic.version = 11 : i64} {
  func.func @_unsqueeze_kernel(%arg0: i32, %arg1: i32, %arg2: i32, %arg3: memref<2x16x32xf32, #tpu.memory_space<vmem>>, %arg4: memref<1x1x4x16x16xf32, #tpu.memory_space<vmem>>, %arg5: memref<1x1x16x64xf32, #tpu.memory_space<vmem>>) attributes {dimension_semantics = [#tpu.dimension_semantics<parallel>, #tpu.dimension_semantics<parallel>, #tpu.dimension_semantics<parallel>], iteration_bounds = array<i64: 2, 2, 1>, scalar_prefetch = 0 : i64, scratch_operands = 0 : i64, tpu.core_type = #tpu.core_type<tc>, window_params = [{pipeline_mode = #tpu.pipeline_mode<synchronous>, transform_indices = @transform_0, window_bounds = array<i64: 2, 16, 32>}, {transform_indices = @transform_1, window_bounds = array<i64: 1, 1, 4, 16, 16>}, {transform_indices = @transform_2, window_bounds = array<i64: 1, 1, 16, 64>}]} {
    %c0 = arith.constant 0 : index
    %c0_0 = arith.constant 0 : index
    %c0_1 = arith.constant 0 : index
    %0 = vector.load %arg3[%c0, %c0_0, %c0_1] : memref<2x16x32xf32, #tpu.memory_space<vmem>>, vector<1x16x32xf32>
    %1 = vector.shape_cast %0 : vector<1x16x32xf32> to vector<16x32xf32>
    %c1 = arith.constant 1 : index
    %c0_2 = arith.constant 0 : index
    %c0_3 = arith.constant 0 : index
    %2 = vector.load %arg3[%c1, %c0_2, %c0_3] : memref<2x16x32xf32, #tpu.memory_space<vmem>>, vector<1x16x32xf32>
    %3 = vector.shape_cast %2 : vector<1x16x32xf32> to vector<16x32xf32>
    %c0_4 = arith.constant 0 : index
    %c0_5 = arith.constant 0 : index
    %c0_6 = arith.constant 0 : index
    %c0_7 = arith.constant 0 : index
    %c0_8 = arith.constant 0 : index
    %4 = vector.load %arg4[%c0_4, %c0_5, %c0_6, %c0_7, %c0_8] : memref<1x1x4x16x16xf32, #tpu.memory_space<vmem>>, vector<1x1x1x16x16xf32>
    %5 = vector.shape_cast %4 : vector<1x1x1x16x16xf32> to vector<1x16x16xf32>
    %c0_9 = arith.constant 0 : index
    %c0_10 = arith.constant 0 : index
    %c1_11 = arith.constant 1 : index
    %c0_12 = arith.constant 0 : index
    %c0_13 = arith.constant 0 : index
    %6 = vector.load %arg4[%c0_9, %c0_10, %c1_11, %c0_12, %c0_13] : memref<1x1x4x16x16xf32, #tpu.memory_space<vmem>>, vector<1x1x1x16x16xf32>
    %7 = vector.shape_cast %6 : vector<1x1x1x16x16xf32> to vector<1x16x16xf32>
    %c0_14 = arith.constant 0 : index
    %c0_15 = arith.constant 0 : index
    %c2 = arith.constant 2 : index
    %c0_16 = arith.constant 0 : index
    %c0_17 = arith.constant 0 : index
    %8 = vector.load %arg4[%c0_14, %c0_15, %c2, %c0_16, %c0_17] : memref<1x1x4x16x16xf32, #tpu.memory_space<vmem>>, vector<1x1x1x16x16xf32>
    %9 = vector.shape_cast %8 : vector<1x1x1x16x16xf32> to vector<1x16x16xf32>
    %c0_18 = arith.constant 0 : index
    %c0_19 = arith.constant 0 : index
    %c3 = arith.constant 3 : index
    %c0_20 = arith.constant 0 : index
    %c0_21 = arith.constant 0 : index
    %10 = vector.load %arg4[%c0_18, %c0_19, %c3, %c0_20, %c0_21] : memref<1x1x4x16x16xf32, #tpu.memory_space<vmem>>, vector<1x1x1x16x16xf32>
    %11 = vector.shape_cast %10 : vector<1x1x1x16x16xf32> to vector<1x16x16xf32>
    %12 = vector.shape_cast %5 : vector<1x16x16xf32> to vector<16x16xf32>
    %13 = vector.shape_cast %7 : vector<1x16x16xf32> to vector<16x16xf32>
    %14 = vector.shape_cast %9 : vector<1x16x16xf32> to vector<16x16xf32>
    %15 = vector.shape_cast %11 : vector<1x16x16xf32> to vector<16x16xf32>
    %cst = arith.constant dense<0.000000e+00> : vector<16x32xf32>
    %16 = tpu.matmul %12, %1, %cst {dimension_numbers = #tpu.dot_dimension_numbers<[1], [0], [0], [1], [0, 0, 1, 1], [], []>} : vector<16x16xf32>, vector<16x32xf32>, vector<16x32xf32> -> vector<16x32xf32>
    %cst_22 = arith.constant dense<0.000000e+00> : vector<16x32xf32>
    %17 = tpu.matmul %13, %3, %cst_22 {dimension_numbers = #tpu.dot_dimension_numbers<[1], [0], [0], [1], [0, 0, 1, 1], [], []>} : vector<16x16xf32>, vector<16x32xf32>, vector<16x32xf32> -> vector<16x32xf32>
    %18 = arith.addf %16, %17 : vector<16x32xf32>
    %cst_23 = arith.constant dense<0.000000e+00> : vector<16x32xf32>
    %19 = tpu.matmul %14, %1, %cst_23 {dimension_numbers = #tpu.dot_dimension_numbers<[1], [0], [0], [1], [0, 0, 1, 1], [], []>} : vector<16x16xf32>, vector<16x32xf32>, vector<16x32xf32> -> vector<16x32xf32>
    %cst_24 = arith.constant dense<0.000000e+00> : vector<16x32xf32>
    %20 = tpu.matmul %15, %3, %cst_24 {dimension_numbers = #tpu.dot_dimension_numbers<[1], [0], [0], [1], [0, 0, 1, 1], [], []>} : vector<16x16xf32>, vector<16x32xf32>, vector<16x32xf32> -> vector<16x32xf32>
    %21 = arith.addf %19, %20 : vector<16x32xf32>
    %22 = tpu.concatenate %18, %21 in 1 : vector<16x32xf32>, vector<16x32xf32> -> vector<16x64xf32>
    %23 = vector.shape_cast %22 : vector<16x64xf32> to vector<1x16x64xf32>
    %c0_25 = arith.constant 0 : index
    %c0_26 = arith.constant 0 : index
    %c0_27 = arith.constant 0 : index
    %c0_28 = arith.constant 0 : index
    %24 = vector.load %arg5[%c0_25, %c0_26, %c0_27, %c0_28] : memref<1x1x16x64xf32, #tpu.memory_space<vmem>>, vector<1x1x16x64xf32>
    %25 = vector.shape_cast %24 : vector<1x1x16x64xf32> to vector<1x16x64xf32>
    %26 = vector.shape_cast %23 : vector<1x16x64xf32> to vector<1x1x16x64xf32>
    tpu.vector_store %arg5[%c0_25, %c0_26, %c0_27, %c0_28], %26 {strides = array<i32>} : memref<1x1x16x64xf32, #tpu.memory_space<vmem>>, vector<1x1x16x64xf32>,
    return
  }
  func.func @transform_0(%arg0: i32, %arg1: i32, %arg2: i32) -> (i32, i32, i32) {
    %c0_i32 = arith.constant 0 : i32
    %c0_i32_0 = arith.constant 0 : i32
    %c0_i32_1 = arith.constant 0 : i32
    %c0_i32_2 = arith.constant 0 : i32
    return %c0_i32, %c0_i32_0, %c0_i32_1 : i32, i32, i32
  }
  func.func @transform_1(%arg0: i32, %arg1: i32, %arg2: i32) -> (i32, i32, i32, i32, i32) {
    %c0_i32 = arith.constant 0 : i32
    %c0_i32_0 = arith.constant 0 : i32
    %c0_i32_1 = arith.constant 0 : i32
    return %arg0, %arg1, %c0_i32, %arg2, %c0_i32_0 : i32, i32, i32, i32, i32
  }
  func.func @transform_2(%arg0: i32, %arg1: i32, %arg2: i32) -> (i32, i32, i32, i32) {
    %c0_i32 = arith.constant 0 : i32
    %c0_i32_0 = arith.constant 0 : i32
    return %arg0, %arg1, %arg2, %c0_i32 : i32, i32, i32, i32
  }
}

</mosaic_0001>

<bundles_post_ra>
// kernel: tpu_custom_call.1
= control target key start
LH: loop header
LB: loop body
LE: loop exit
PB: predicated region body
PF: predicated region fallthrough
CT: control target
= control target key end

     0   :  { %s1336_s0 = inlined_call_operand.hbm [shape: f32[2,16,32], index: 0, kind: input, shape index: {}]   ;;  %s1337_s1 = inlined_call_operand.hbm [shape: f32[2,2,4,16,16], index: 1, kind: input, shape index: {}]   ;;  %s1338_s2 = inlined_call_operand.hbm [shape: f32[2,2,16,64], index: 2, kind: output, shape index: {}]  }
   0x1   :  { %1348 = sst [smem:[#allocation14_spill]] %s1336_s0 }
   0x2   :  { %7 = vsyncpa [#allocation3], 0 }
   0x3   :  { %8 = vsyncpa [#allocation6], 0 }
   0x4   :  { %10 = vsyncpa [#allocation6 + $0x1], 0 }
   0x5   :  { %11 = vsyncpa [#allocation4], 0 }
   0x6   :  { %13 = vsyncpa [#allocation4 + $0x1], 0  ;;  %s1068_s9 = smov 0   ;;  %s1070_s10 = smov 0  }
   0x7   :  { %s1072_s11 = smov 0   ;;  %s1074_s12 = smov 0  }
   0x8   :  { %s1076_s13 = smov 0   ;;  %s1078_s14 = smov 0  }
   0x9   :  { %s1080_s15 = smov 0   ;;  %s1082_s16 = smov 0  }
   0xa LB: > { %1349 = sst [smem:[#allocation11_spill]] %s1035_s14  ;;  %s692_s17 = sadd.s32 4294967295, %s1043_s16   ;;  %s1043_s16 = sphi %s1082_s16, %s19_s16   ;;  %s1039_s15 = sphi %s1080_s15, %s1376_s15   ;;  %s1035_s14 = sphi %s1078_s14, %s1370_s14   ;;  %s1031_s13 = sphi %s1076_s13, %s1375_s13   ;;  %s1027_s12 = sphi %s1074_s12, %s1369_s12   ;;  %s1023_s11 = sphi %s1072_s11, %s1374_s11   ;;  %s1019_s10 = sphi %s1070_s10, %s1373_s10   ;;  %s1015_s9 = sphi %s1068_s9, %s1372_s9  }
   0xb   : > { %s693_s18 = sadd.s32 4294967294, %s1043_s16   ;;  %p83_p0 = scmp.ne.s32.totalorder %s1019_s10, %s1015_s9 }
   0xc   : > { %p1112_p1 = scmp.eq.s32.totalorder %s692_s17, 0  ;;  %p1116_p2 = scmp.eq.s32.totalorder %s692_s17, 3 }
   0xd   : > { %p117_p3 = scmp.eq.s32.totalorder %s693_s18, 3  ;;  %p694_p5 = scmp.ge.s32.totalorder %s1043_s16, 1 }
   0xe   : > { %s1350_s19 = scalar_select %p1112_p1, 1, 0 }
   0xf   : > { %s1351_s20 = scalar_select %p1116_p2, 1, 0 }
  0x10   : > { %p1122_p4 = por %p1112_p1, %p83_p0  ;;  %p1127_p6 = por %p117_p3, %p83_p0 }
  0x11   : > { %p124_p7 = scmp.lt.s32.totalorder %s1043_s16, 5  ;;  %s1045_s24 = smov [#allocation2]  }
  0x12   : > { %s1352_s21 = scalar_select %p1122_p4, 1, 0 }
  0x13   : > { %s1353_s22 = scalar_select %p1127_p6, 1, 0 }
  0x14   : > { %p1132_p8 = pnand %p694_p5, %p124_p7  ;;  %s136_s25 = sshll.u32 %s1045_s24, 4  ;;  %s137_s25 = int_to_ptr.vmem [resolvable:$true] %s136_s25 }
  0x15   : > { %s1356_s0 = sld [smem:[#allocation14_spill]] }
  0x16   : > { %s1354_s23 = scalar_select %p1132_p8, 1, 0 }
  0x17   : > { %p797_p9 = pneg %p1132_p8 }
  0x19   : > { %p1140_p10 = pnand %p797_p9, %p1112_p1 }
  0x1b   : > { %s883_s29 = scalar_lea.hbm %s1356_s0, 512  ;;  %p885_p12 = pneg %p1140_p10 }
  0x1c   : > { %p884_p11 = scmp.ne.s32.totalorder %s1356_s0, %s883_s29  ;;  %p890_p3 = scmp.lt.u32.totalorder %s883_s29, %s1356_s0 }
  0x1e   : > { %p886_p13 = pnand %p885_p12, %p884_p11 }
  0x20   : > { %p887_p0 = pneg %p886_p13 }
  0x22   : > { %p892_p5 = pnand %p890_p3, %p887_p0 }
  0x24   : > { %895 = shalt.err (!%p892_p5)
}
  0x25   : > { %s896_s6 = scalar_lea.vmem %s137_s25, 512  ;;  %p904_p4 = scmp.lt.s32.totalorder %s137_s25, %s137_s25 }
  0x26   : > { %p897_p7 = scmp.ne.s32.totalorder %s137_s25, %s896_s6  ;;  %p905_p1 = scmp.lt.s32.totalorder %s896_s6, %s896_s6 }
  0x28   : > { %p899_p9 = pnand %p897_p7, %p885_p12  ;;  %p906_p8 = por %p905_p1, %p904_p4 }
  0x2a   : > { %p900_p6 = pneg %p899_p9 }
  0x2c   : > { %p907_p2 = pnand %p906_p8, %p900_p6 }
  0x2e   : > { %910 = shalt.err (!%p907_p2)
}
  0x2f   : > { %s1343_s7 = smov 128   ;;  %s1344_s8 = smov 8  }
  0x30   : > { %800 = dma.hbm_to_vmem [thread:$0]  (!%p1140_p10), %s1356_s0, 512, %s137_s25, [#allocation3], %s1343_s7, %s1343_s7, %s1344_s8  }
  0x31   : > { %s34_s24 = sadd.s32 1, %s1035_s14  ;;  %s38_s27 = sadd.s32 1, %s1039_s15 }
  0x32   : > { %p36_p1 = scmp.ge.s32.totalorder %s34_s24, 2  ;;  %s70_s28 = sadd.s32 1, %s1023_s11 }
  0x33   : > { %p77_p2 = scmp.ne.s32.totalorder %s1023_s11, %s1019_s10  ;;  %p78_p4 = scmp.eq.s32.totalorder %s1043_s16, 0 }
  0x34   : > { %s1378_s24 = smov (%p36_p1, %s34_s24), 0  ;;  %s1380_s27 = smov (!%p36_p1, %s38_s27), %s1039_s15 }
  0x35   : > { %1357 = sst [smem:[#allocation12_spill]] %s1378_s24  ;;  %s64_s26 = ssub.s32 %s1035_s14, %s1378_s24 }
  0x36   : > { %p40_p6 = scmp.ge.s32.totalorder %s1380_s27, 2  ;;  %p1358_p8 = scmp.ne.s32.totalorder %s1351_s20, 0 }
  0x37   : > { %p1180_p10 = por %p78_p4, %p77_p2  ;;  %p810_p12 = scmp.lt.s32.totalorder %s1043_s16, 4 }
  0x38   : > { %p1176_p11 = por %p1358_p8, %p77_p2  ;;  %s1382_s27 = smov (%p40_p6, %s1380_s27), 0 }
  0x39   : > { %1361 = sst [smem:[#allocation13_spill]] %s1382_s27  ;;  %s150_s30 = sand.u32 1, %s1023_s11  }
  0x3a   : > { %s698_s3 = sshll.u32 %s1035_s14, 3  ;;  %s63_s4 = ssub.s32 %s1039_s15, %s1382_s27 }
  0x3b   : > { %s65_s5 = sor.u32 %s64_s26, %s63_s4  ;;  %s697_s6 = sshll.u32 %s150_s30, 6 }
  0x3c   : > { %p68_p13 = scmp.eq.s32.totalorder %s65_s5, 0  ;;  %s699_s20 = sshll.u32 %s1039_s15, 4 }
  0x3d   : > { %s154_s17 = scalar_lea.vmem [#allocation5], %s697_s6  ;;  %s162_s8 = sadd.s32 %s699_s20, %s698_s3 }
  0x3e   : > { %s165_s18 = sshll.u32 %s154_s17, 4  ;;  %s700_s0 = sshll.u32 %s162_s8, 7  ;;  %s1195_s18 = int_to_ptr.vmem [resolvable:$true] %s165_s18 }
  0x3f   : > { %s1193_s7 = scalar_select %p68_p13, %s1023_s11, %s70_s28  }
  0x40   : > { %p1201_p0 = pnand %p810_p12, %p1180_p10  ;;  %s1208_s26 = scalar_lea.hbm %s1337_s1, %s700_s0 }
  0x41   : > { %s1210_s28 = scalar_lea.sflag [#allocation6], %s150_s30  ;;  %s911_s8 = scalar_lea.hbm %s1208_s26, 1024 }
  0x42   : > { %p912_p3 = scmp.ne.s32.totalorder %s1208_s26, %s911_s8  ;;  %p913_p5 = pneg %p1201_p0 }
  0x43   : > { %s916_s27 = scalar_lea.hbm %s1337_s1, 4096  ;;  %p917_p1 = scmp.lt.u32.totalorder %s1208_s26, %s1337_s1 }
  0x44   : > { %p914_p7 = pnand %p913_p5, %p912_p3  ;;  %p918_p2 = scmp.lt.u32.totalorder %s916_s27, %s911_s8 }
  0x45   : > { %p920_p6 = scmp.lt.u32.totalorder %s911_s8, %s1208_s26 }
  0x46   : > { %p915_p9 = pneg %p914_p7  ;;  %p919_p4 = por %p918_p2, %p917_p1 }
  0x48   : > { %p921_p8 = por %p920_p6, %p919_p4 }
  0x4a   : > { %p922_p10 = pnand %p921_p8, %p915_p9 }
  0x4c   : > { %925 = shalt.err (!%p922_p10)
}
  0x4d   : > { %s926_s30 = scalar_lea.vmem %s1195_s18, 1024  ;;  %s1048_s4 = smov [#allocation5]  }
  0x4e   : > { %p927_p12 = scmp.ne.s32.totalorder %s1195_s18, %s926_s30  ;;  %s931_s5 = sshll.u32 %s1048_s4, 4  ;;  %s932_s5 = int_to_ptr.vmem [resolvable:$false] %s931_s5 }
  0x4f   : > { %s933_s6 = scalar_lea.vmem %s932_s5, 2048  ;;  %p934_p7 = scmp.lt.s32.totalorder %s1195_s18, %s932_s5 }
  0x50   : > { %p929_p13 = pnand %p927_p12, %p913_p5  ;;  %p935_p1 = scmp.lt.s32.totalorder %s933_s6, %s926_s30 }
  0x52   : > { %p930_p3 = pneg %p929_p13  ;;  %p936_p2 = por %p935_p1, %p934_p7 }
  0x54   : > { %p937_p4 = pnand %p936_p2, %p930_p3 }
  0x56   : > { %940 = shalt.err (!%p937_p4)
}
  0x57   : > { %s1363_s20 = smov 8   ;;  %s1364_s17 = smov 128  }
  0x58   : > { %804 = dma.hbm_to_vmem [thread:$0]  (!%p1201_p0), %s1208_s26, 1024, %s1195_s18, %s1210_s28, %s1364_s17, %s1364_s17, %s1363_s20  }
  0x59   : > { %p1365_p5 = scmp.ne.s32.totalorder %s1354_s23, 0 }
  0x5a   : > { %p1366_p9 = scmp.ne.s32.totalorder (!%p1365_p5), %s1350_s19, 0 }
  0x5b   : > { %177 = sbr.rel (%p1365_p5) target bundleno = 466 (0x1d2), region = 28 }
  0x62   : > { %1002 = dma.done.wait (%p1366_p9), [#allocation3], 512  }
  0x63   : > { %1004 = vsyncadd (%p1366_p9), [#allocation3], 4294966784  ;;  %s1248_s8 = sand.u32 1, %s1019_s10   ;;  %p1367_p0 = scmp.ne.s32.totalorder %s1352_s21, 0 }
  0x64   : > { %s703_s24 = sshll.u32 %s1248_s8, 6  ;;  %s184_s25 = scalar_lea.sflag [#allocation6], %s1248_s8 }
  0x65   : > { %s1252_s14 = scalar_lea.vmem [#allocation5], %s703_s24 }
  0x66   : > { %1006 = dma.done.wait (%p1367_p0), %s184_s25, 1024  }
  0x67   : > { %1008 = vsyncadd (%p1367_p0), %s184_s25, 4294966272  ;;  %vm226_vm0 = vcmask 130048   ;;  %v213_v0 = vld [vmem:[#allocation2 + $0x10] sm:$0xff]  ;;  %v214_v1 = vld [vmem:[#allocation2 + $0x18] sm:$0xff]  ;;  %s1049_s19 = smov 32   ;;  %s720_s21 = sshll.u32 %s1027_s12, 1 }
  0x68   : > { %v709_v2 = vld [vmem:[%s1252_s14 + $0x30] sm:$0xff]  ;;  %v769_v3 = vpack.c.bf16 %v214_v1, %v213_v0  ;;  %v210_v4 = vld [vmem:[#allocation2] sm:$0xff]  ;;  %v211_v5 = vld [vmem:[#allocation2 + $0x8] sm:$0xff]  ;;  %s721_s23 = sshll.u32 %s1031_s13, 2  ;;  %s704_s18 = sshll.u32 %s1248_s8, 4  ;;  %vm559_vm1 = vcmask 261120  }
  0x69   : > { %759 = vmatprep.mubr.msk.f32.mxu1 %vm226_vm0, %v709_v2  ;;  %v773_v6 = vpack.c.bf16 %v211_v5, %v210_v4  ;;  %v705_v7 = vld [vmem:[%s1252_s14 + $0x10] sm:$0xff]  ;;  %v710_v8 = vld [vmem:[%s1252_s14 + $0x38] sm:$0xff]  ;;  %v707_v10 = vld [vmem:[%s1252_s14 + $0x20] sm:$0xff]  ;;  %s580_s26 = sadd.s32 %s721_s23, %s720_s21  ;;  %vm562_vm2 = vcmask 523264   ;;  %s207_s28 = scalar_lea.vmem [#allocation7], %s704_s18 }
  0x6a   : > { %778 = vmatprep.subr.bf16.mxu1 %v769_v3  ;;  %770 = vmatprep.subr.bf16.mxu0 %v769_v3  ;;  %v706_v9 = vld [vmem:[%s1252_s14 + $0x18] sm:$0xff]  ;;  %v215_v11 = vld [vmem:[%s1252_s14] sm:$0xff]  ;;  %v708_v12 = vld [vmem:[%s1252_s14 + $0x28] sm:$0xff]  ;;  %s583_s27 = sshll.u32 %s207_s28, 4  ;;  %s722_s0 = sshll.u32 %s580_s26, 7  ;;  %s1277_s27 = int_to_ptr.vmem [resolvable:$true] %s583_s27 }
  0x6b   : > { %780 = vmatpush3.bf16.msra.mxu1 %v769_v3  ;;  %772 = vmatpush3.bf16.msra.mxu0 %v769_v3  ;;  %v216_v13 = vld [vmem:[%s1252_s14 + $0x8] sm:$0xff]  ;;  %s1282_s13 = scalar_lea.hbm %s1338_s2, %s722_s0  ;;  %s566_s30 = scalar_lea.sflag [#allocation4], %s1248_s8 }
  0x6c   : > { %782 = vmatprep.subr.bf16.mxu1 %v773_v6  ;;  %745 = vmatprep.mubr.msk.f32.mxu0 %vm226_vm0, %v705_v7  ;;  %s941_s4 = scalar_lea.vmem %s1277_s27, 256  ;;  %s1050_s5 = smov [#allocation7]  }
  0x6d   : > { %774 = vmatprep.subr.bf16.mxu0 %v773_v6  ;;  %p942_p6 = scmp.ne.s32.totalorder %s1277_s27, %s941_s4  ;;  %s945_s6 = sshll.u32 %s1050_s5, 4  ;;  %s946_s6 = int_to_ptr.vmem [resolvable:$false] %s945_s6 }
  0x6e   : > { %760 = vmatmul.mubr.msk.f32.vlgmr.msra.gmra.mrb[0].mxu1 %vm226_vm0, %v710_v8  ;;  %746 = vmatmul.mubr.msk.f32.vlgmr.msra.gmra.mrb[0].mxu0 %vm226_vm0, %v706_v9  ;;  %s947_s20 = scalar_lea.vmem %s946_s6, 512  ;;  %p948_p12 = scmp.lt.s32.totalorder %s1277_s27, %s946_s6 }
  0x6f   : > { %784 = vmatpush3.bf16.msra.mxu1 %v773_v6  ;;  %766 = vmatprep.mubr.msk.f32.mxu1 %vm226_vm0, %v707_v10  ;;  %p943_p8 = pnand %p942_p6, %p1176_p11  ;;  %p949_p13 = scmp.lt.s32.totalorder %s947_s20, %s941_s4 }
  0x70   : > { %776 = vmatpush3.bf16.msra.mxu0 %v773_v6  ;;  %752 = vmatprep.mubr.msk.f32.mxu0 %vm226_vm0, %v215_v11 }
  0x71   : > { %p944_p10 = pneg %p943_p8  ;;  %p950_p3 = por %p949_p13, %p948_p12 }
  0x73   : > { %p951_p7 = pnand %p950_p3, %p944_p10 }
  0x76   : > { %767 = vmatmul.mubr.msk.f32.vlgmr.msra.gmra.mrb[0].mxu1 %vm226_vm0, %v708_v12  ;;  %753 = vmatmul.mubr.msk.f32.vlgmr.msra.gmra.mrb[0].mxu0 %vm226_vm0, %v216_v13 }
 0x149   : > { %v768_v14 = vpop.f32.mrb[0].mxu1  ;;  %v754_v15 = vpop.f32.mrb[0].mxu0 }
 0x14a   : > { %v542_v16 = vpop.f32.mrb[1].mxu1  ;;  %v380_v17 = vpop.f32.mrb[1].mxu0 }
 0x14b   : > { %553 = vrot.lane.b32.xlu0 %v542_v16, %s1049_s19 }
 0x14f   : > { %555 = vrot.lane.b32.xlu0 %v768_v14, %s1049_s19 }
 0x1bd   : > { %v554_v18 = vpop.permute.xlu0 %553 }
 0x1be   : > { %v560_v19 = vsel %vm559_vm1, %v380_v17, %v554_v18 }
 0x1bf   : > { %563 = vst.msk [vmem:[%s207_s28] sm:$0xff] %vm562_vm2, %v560_v19 }
 0x1c1   : > { %v556_v20 = vpop.permute.xlu0 %555 }
 0x1c2   : > { %v561_v21 = vsel %vm559_vm1, %v754_v15, %v556_v20 }
 0x1c3   : > { %564 = vst.msk [vmem:[%s207_s28 + $0x8] sm:$0xff] %vm562_vm2, %v561_v21 }
 0x1c4   : > { %954 = shalt.err (!%p951_p7)
}
 0x1c5   : > { %s955_s17 = scalar_lea.hbm %s1282_s13, 256  ;;  %s959_s14 = scalar_lea.hbm %s1338_s2, 1024 }
 0x1c6   : > { %p956_p1 = scmp.ne.s32.totalorder %s1282_s13, %s955_s17  ;;  %p960_p5 = scmp.lt.u32.totalorder %s1282_s13, %s1338_s2 }
 0x1c7   : > { %p961_p9 = scmp.lt.u32.totalorder %s959_s14, %s955_s17  ;;  %p963_p6 = scmp.lt.u32.totalorder %s955_s17, %s1282_s13 }
 0x1c8   : > { %p957_p2 = pnand %p956_p1, %p1176_p11 }
 0x1c9   : > { %p962_p0 = por %p961_p9, %p960_p5 }
 0x1ca   : > { %p958_p4 = pneg %p957_p2 }
 0x1cb   : > { %p964_p8 = por %p963_p6, %p962_p0 }
 0x1cd   : > { %p965_p10 = pnand %p964_p8, %p958_p4 }
 0x1cf   : > { %968 = shalt.err (!%p965_p10)
}
 0x1d0   : > { %s1051_s23 = smov 128   ;;  %s1052_s18 = smov 8  }
 0x1d1   : > { %795 = dma.vmem_to_hbm [thread:$0]  (%p1176_p11), %s1277_s27, 256, %s1282_s13, %s566_s30, %s1051_s23, %s1051_s23, %s1052_s18  }
 0x1d2 PF: > { %p812_p12 = scmp.ge.s32.totalorder %s1043_s16, 2  ;;  %s598_s26 = sand.u32 1, %s1015_s9  }
 0x1d3   : > { %p1368_p13 = scmp.ne.s32.totalorder %s1353_s22, 0  ;;  %s599_s28 = scalar_lea.sflag [#allocation4], %s598_s26 }
 0x1d5   : > { %p806_p3 = pnand %p812_p12, %p1368_p13 }
 0x1d7   : > { %1010 = dma.done.wait (!%p806_p3), %s599_s28, 256  }
 0x1d8   : > { %1012 = vsyncadd (!%p806_p3), %s599_s28, 4294967040  ;;  %s19_s16 = sadd.s32 1, %s1043_s16   ;;  %s1369_s12 = sld [smem:[#allocation11_spill]] }
 0x1d9   : > { %p16_p7 = scmp.ge.s32.totalorder %s19_s16, 6   ;;  %s1370_s14 = sld [smem:[#allocation12_spill]] }
 0x1da   : > { %s1371_s29 = sld [smem:[#allocation13_spill]]  ;;  %s1372_s9 = smov %s1019_s10 }
 0x1db   : > { %s1373_s10 = smov %s1023_s11  ;;  %s1374_s11 = smov %s1193_s7 }
 0x1dc   : > { %s1375_s13 = smov %s1039_s15  ;;  %18 = sbr.rel (!%p16_p7) target bundleno = 10 (0xa), region = 82 }
 0x1e0   : > { %s1376_s15 = smov %s1371_s29 }
 0x1e3   :  { %604 = vsyncpa [#allocation3], 1 }
 0x1e4   :  { %606 = vsyncpa [#allocation3 + $0x1], 1 }
 0x1e5   :  { %607 = vsyncpa [#allocation6], 1 }
 0x1e6   :  { %609 = vsyncpa [#allocation6 + $0x1], 1 }
 0x1e7   :  { %610 = vsyncpa [#allocation4], 1 }
 0x1e8   :  { %612 = vsyncpa [#allocation4 + $0x1], 1 }

</bundles_post_ra>
